<compile_context>
chip_gen: v7x
topology: tpu7x:2x2x1
jax: 0.10.0
libtpu: 0.0.40
codegen_flags: <defaults>
</compile_context>

<pallas_src>
import jax
import jax.numpy as jnp
from jax import lax
from jax.experimental import pallas as pl
from jax.experimental.pallas import tpu as pltpu

_VMEM_LIMIT = 64 * 1024 * 1024   # raise scoped-VMEM default (16 MiB v5e / 32 MiB v6e)


def _round_up(x, m):
    return (x + m - 1) // m * m


def _largest_divisor_tile(n, candidates):
    for c in candidates:
        if n % c == 0:
            return c
    return n


def _pick_batch_tile(Bp):
    # One big batch tile (splitting on 1-TC chips is pure per-step overhead).
    # Split into exactly two tiles only when the batch is large enough that
    # sharding the "parallel" axis across v7x's two TensorCores still keeps
    # >=128 MXU rows per core.
    if Bp >= 256 and (Bp // 2) % 8 == 0:
        return Bp // 2
    return Bp


# ------------------ fused matmul + bias (input-gate projection) ---------------

def _matmul_bias_kernel(x_ref, w_ref, b_ref, o_ref):
    acc = jnp.dot(x_ref[...], w_ref[...], preferred_element_type=jnp.float32)
    o_ref[...] = (acc + b_ref[...]).astype(o_ref.dtype)


def matmul_bias(x, w, b, *, out_dtype=jnp.bfloat16, max_block_m=512):
    """(M, K) @ (K, N) + (1, N) -> (M, N). bf16 MXU operands, f32 accumulate."""
    M, K = x.shape
    N = w.shape[1]
    Mp = _round_up(M, 8)                       # sublane alignment only (<=7 pad rows)
    if Mp != M:
        x = jnp.pad(x, ((0, Mp - M), (0, 0)))
    bm = _largest_divisor_tile(Mp, (max_block_m, 256, 128, 64, 32, 16, 8))
    x = x.astype(jnp.bfloat16)
    w = w.astype(jnp.bfloat16)
    b = b.astype(jnp.float32).reshape(1, N)

    out = pl.pallas_call(
        _matmul_bias_kernel,
        out_shape=jax.ShapeDtypeStruct((Mp, N), out_dtype),
        grid_spec=pltpu.PrefetchScalarGridSpec(
            num_scalar_prefetch=0,
            grid=(Mp // bm,),
            in_specs=[
                pl.BlockSpec((bm, K), lambda i: (i, 0)),   # activations (M-tiled)
                pl.BlockSpec((K, N), lambda i: (0, 0)),    # weights, VMEM resident
                pl.BlockSpec((1, N), lambda i: (0, 0)),    # bias, VMEM resident
            ],
            out_specs=pl.BlockSpec((bm, N), lambda i: (i, 0)),
        ),
        compiler_params=pltpu.CompilerParams(
            dimension_semantics=("parallel",),
            vmem_limit_bytes=_VMEM_LIMIT),
    )(x, w, b)
    return out[:M]


# ---------------- time-blocked GRU recurrence fused with output Linear --------

def _gru_fused_kernel(xg_ref, whh_ref, bhh_ref, wl_ref, bl_ref, out_ref,
                      h_acc, h_chunk):
    TT = xg_ref.shape[0]
    hid = whh_ref.shape[0]

    @pl.when(pl.program_id(1) == 0)            # first time-chunk: h_0 = 0
    def _():
        h_acc[...] = jnp.zeros_like(h_acc)

    def step(i, h_prev):
        # recurrent projection on the MXU: bf16 operands, f32 accumulation
        hg = jnp.dot(h_prev.astype(jnp.bfloat16), whh_ref[...],
                     preferred_element_type=jnp.float32) + bhh_ref[...]
        # torch gate order (r, z, n); gate slices read straight from the ref
        r = jax.nn.sigmoid(xg_ref[i, :, :hid].astype(jnp.float32)
                           + hg[:, :hid])
        z = jax.nn.sigmoid(xg_ref[i, :, hid:2 * hid].astype(jnp.float32)
                           + hg[:, hid:2 * hid])
        n = jnp.tanh(xg_ref[i, :, 2 * hid:].astype(jnp.float32)
                     + r * hg[:, 2 * hid:])
        h_new = (1.0 - z) * n + z * h_prev
        h_chunk[i] = h_new.astype(h_chunk.dtype)
        return h_new

    h_last = lax.fori_loop(0, TT, step, h_acc[...], unroll=True)
    h_acc[...] = h_last                        # f32 carry into next time chunk

    # fused output Linear over the whole chunk: (TT*bb, hid) @ (hid, outdim)
    bb = h_chunk.shape[1]
    h_flat = h_chunk[...].reshape(TT * bb, hid)
    o = jnp.dot(h_flat, wl_ref[...],
                preferred_element_type=jnp.float32) + bl_ref[...]
    out_ref[...] = o.reshape(TT, bb, -1).astype(out_ref.dtype)


def gru_scan_linear(xg, w_hh, b_hh, w_l, b_l, *, out_dtype=jnp.float32):
    """xg: (T, Bp, 3*hid) precomputed input gates (bf16).
    Returns OUT: (T, Bp, outdim) = Linear(GRU hidden states)."""
    T, Bp, three_h = xg.shape
    hid = w_hh.shape[0]
    outdim = w_l.shape[1]
    TT = _largest_divisor_tile(T, (16, 8, 4, 2, 1))   # timesteps per grid step
    bb = _pick_batch_tile(Bp)

    return pl.pallas_call(
        _gru_fused_kernel,
        out_shape=jax.ShapeDtypeStruct((T, Bp, outdim), out_dtype),
        grid_spec=pltpu.PrefetchScalarGridSpec(
            num_scalar_prefetch=0,
            grid=(Bp // bb, T // TT),          # batch tiles parallel, time sequential
            in_specs=[
                pl.BlockSpec((TT, bb, three_h), lambda b, t: (t, b, 0)),
                pl.BlockSpec((hid, three_h), lambda b, t: (0, 0)),   # W_hh resident
                pl.BlockSpec((1, three_h), lambda b, t: (0, 0)),     # b_hh resident
                pl.BlockSpec((hid, outdim), lambda b, t: (0, 0)),    # W_l  resident
                pl.BlockSpec((1, outdim), lambda b, t: (0, 0)),      # b_l  resident
            ],
            out_specs=pl.BlockSpec((TT, bb, outdim), lambda b, t: (t, b, 0)),
            scratch_shapes=[
                pltpu.VMEM((bb, hid), jnp.float32),        # f32 hidden-state carry
                pltpu.VMEM((TT, bb, hid), jnp.bfloat16),   # chunk of hidden states
            ],
        ),
        compiler_params=pltpu.CompilerParams(
            dimension_semantics=("parallel", "arbitrary"),
            vmem_limit_bytes=_VMEM_LIMIT),
    )(xg.astype(jnp.bfloat16),
      w_hh.astype(jnp.bfloat16),
      b_hh.astype(jnp.float32).reshape(1, three_h),
      w_l.astype(jnp.bfloat16),
      b_l.astype(jnp.float32).reshape(1, outdim))


# ------------------------------ full forward ----------------------------------

def gru_with_linear_forward(x, params):
    """x: (seq, batch, indim) (batch_first=False). Returns (seq, batch, outdim)."""
    w_ih, b_ih, w_hh, b_hh, w_l, b_l = params
    T, B, indim = x.shape
    hid = w_hh.shape[0]

    Bp = _round_up(B, 8)                       # sublane alignment
    if Bp != B:
        x = jnp.pad(x, ((0, 0), (0, Bp - B), (0, 0)))

    # 1) input-gate projection for every (t, b) row at once (big-M, lane-dense,
    #    bf16 output -> half the HBM traffic into the scan)
    xg = matmul_bias(x.reshape(T * Bp, indim), w_ih, b_ih)
    xg = xg.reshape(T, Bp, 3 * hid)

    # 2+3) time-blocked GRU recurrence fused with the output Linear
    out = gru_scan_linear(xg, w_hh, b_hh, w_l, b_l)
    # TODO(synk): dropout / flatten / output_each_layer / has_padding branches
    # are off by default in GRUWithLinear and are not implemented here.
    return out[:, :B, :]


# ------------------------------ references & init -----------------------------

def _mm_bf16(a, w):
    # mirrors kernel numerics: bf16 operands, f32 accumulation
    return jnp.dot(a.astype(jnp.bfloat16).astype(jnp.float32),
                   w.astype(jnp.bfloat16).astype(jnp.float32))


def _mm_f32(a, w):
    return jnp.dot(a, w, precision=lax.Precision.HIGHEST)


def gru_with_linear_ref(x, params, mirror_bf16=True):
    w_ih, b_ih, w_hh, b_hh, w_l, b_l = params
    mm = _mm_bf16 if mirror_bf16 else _mm_f32
    rnd = ((lambda v: v.astype(jnp.bfloat16).astype(jnp.float32))
           if mirror_bf16 else (lambda v: v))
    T, B, _ = x.shape
    hid = w_hh.shape[0]
    xg = rnd(mm(x.reshape(T * B, -1), w_ih) + b_ih).reshape(T, B, 3 * hid)
    h = jnp.zeros((B, hid), jnp.float32)
    hs = []
    for t in range(T):
        hg = mm(h, w_hh) + b_hh
        r = jax.nn.sigmoid(xg[t, :, :hid] + hg[:, :hid])
        z = jax.nn.sigmoid(xg[t, :, hid:2 * hid] + hg[:, hid:2 * hid])
        n = jnp.tanh(xg[t, :, 2 * hid:] + r * hg[:, 2 * hid:])
        h = (1.0 - z) * n + z * h
        hs.append(h)
    h_all = jnp.stack(hs, axis=0).reshape(T * B, hid)
    out = mm(h_all, w_l) + b_l
    return out.reshape(T, B, -1)


def init_params(key, indim, hiddim, outdim, dtype=jnp.float32):
    ks = jax.random.split(key, 6)
    kg = 1.0 / jnp.sqrt(hiddim)
    # GRU weights stored pre-transposed, gate order (r, z, n) like torch.nn.GRU
    w_ih = jax.random.uniform(ks[0], (indim, 3 * hiddim), dtype, -kg, kg)
    b_ih = jax.random.uniform(ks[1], (1, 3 * hiddim), dtype, -kg, kg)
    w_hh = jax.random.uniform(ks[2], (hiddim, 3 * hiddim), dtype, -kg, kg)
    b_hh = jax.random.uniform(ks[3], (1, 3 * hiddim), dtype, -kg, kg)
    # Linear stored pre-transposed: (hiddim, outdim)
    w_l = jax.random.uniform(ks[4], (hiddim, outdim), dtype, -kg, kg)
    b_l = jax.random.uniform(ks[5], (1, outdim), dtype, -kg, kg)
    return (w_ih, b_ih, w_hh, b_hh, w_l, b_l)


if __name__ == "__main__":
    key = jax.random.PRNGKey(0)
    k_x, k_p = jax.random.split(key)

    # Small but lane-dense / MXU-friendly shapes: feature dims are multiples of
    # 128 (no masked vst), batch a multiple of 8. batch_first=False layout.
    seq, batch, indim, hiddim, outdim = 16, 8, 128, 128, 128
    x = jax.random.normal(k_x, (seq, batch, indim), jnp.float32)
    params = init_params(k_p, indim, hiddim, outdim)

    out = gru_with_linear_forward(x, params)
    out = jax.block_until_ready(out)
    assert out.shape == (seq, batch, outdim)

    # tight check vs a reference that mirrors the kernel's bf16 rounding
    ref = gru_with_linear_ref(x, params, mirror_bf16=True)
    assert jnp.allclose(out, ref, atol=2e-3, rtol=2e-3), float(
        jnp.max(jnp.abs(out - ref)))

    # loose sanity check vs a full-f32 reference (bf16 rounding compounds a bit)
    ref32 = gru_with_linear_ref(x, params, mirror_bf16=False)
    assert jnp.allclose(out, ref32, atol=1e-1, rtol=1e-1), float(
        jnp.max(jnp.abs(out - ref32)))

    print("KERNEL_OK")
</pallas_src>

<mosaic_0001>
module attributes {stable_mosaic.version = 11 : i64} {
  func.func @_matmul_bias_kernel(%arg0: i32, %arg1: memref<128x128xbf16, #tpu.memory_space<vmem>>, %arg2: memref<128x384xbf16, #tpu.memory_space<vmem>>, %arg3: memref<1x384xf32, #tpu.memory_space<vmem>>, %arg4: memref<128x384xbf16, #tpu.memory_space<vmem>>) attributes {dimension_semantics = [#tpu.dimension_semantics<parallel>], iteration_bounds = array<i64: 1>, scalar_prefetch = 0 : i64, scratch_operands = 0 : i64, tpu.core_type = #tpu.core_type<tc>, window_params = [{transform_indices = @transform_0, window_bounds = array<i64: 128, 128>}, {pipeline_mode = #tpu.pipeline_mode<synchronous>, transform_indices = @transform_1, window_bounds = array<i64: 128, 384>}, {pipeline_mode = #tpu.pipeline_mode<synchronous>, transform_indices = @transform_2, window_bounds = array<i64: 1, 384>}, {transform_indices = @transform_3, window_bounds = array<i64: 128, 384>}]} {
    %c0 = arith.constant 0 : index
    %c0_0 = arith.constant 0 : index
    %0 = vector.load %arg1[%c0, %c0_0] : memref<128x128xbf16, #tpu.memory_space<vmem>>, vector<128x128xbf16>
    %c0_1 = arith.constant 0 : index
    %c0_2 = arith.constant 0 : index
    %1 = vector.load %arg2[%c0_1, %c0_2] : memref<128x384xbf16, #tpu.memory_space<vmem>>, vector<128x384xbf16>
    %cst = arith.constant dense<0.000000e+00> : vector<128x384xf32>
    %2 = tpu.matmul %0, %1, %cst {dimension_numbers = #tpu.dot_dimension_numbers<[1], [0], [0], [1], [0, 0, 1, 1], [], []>} : vector<128x128xbf16>, vector<128x384xbf16>, vector<128x384xf32> -> vector<128x384xf32>
    %c0_3 = arith.constant 0 : index
    %c0_4 = arith.constant 0 : index
    %3 = vector.load %arg3[%c0_3, %c0_4] : memref<1x384xf32, #tpu.memory_space<vmem>>, vector<1x384xf32>
    %4 = vector.broadcast %3 : vector<1x384xf32> to vector<128x384xf32>
    %5 = arith.addf %2, %4 : vector<128x384xf32>
    %6 = arith.truncf %5 : vector<128x384xf32> to vector<128x384xbf16>
    %c0_5 = arith.constant 0 : index
    %c0_6 = arith.constant 0 : index
    %7 = vector.load %arg4[%c0_5, %c0_6] : memref<128x384xbf16, #tpu.memory_space<vmem>>, vector<128x384xbf16>
    tpu.vector_store %arg4[%c0_5, %c0_6], %6 {strides = array<i32>} : memref<128x384xbf16, #tpu.memory_space<vmem>>, vector<128x384xbf16>,
    return
  }
  func.func @transform_0(%arg0: i32) -> (i32, i32) {
    %c0_i32 = arith.constant 0 : i32
    %c0_i32_0 = arith.constant 0 : i32
    return %arg0, %c0_i32 : i32, i32
  }
  func.func @transform_1(%arg0: i32) -> (i32, i32) {
    %c0_i32 = arith.constant 0 : i32
    %c0_i32_0 = arith.constant 0 : i32
    %c0_i32_1 = arith.constant 0 : i32
    return %c0_i32, %c0_i32_0 : i32, i32
  }
  func.func @transform_2(%arg0: i32) -> (i32, i32) {
    %c0_i32 = arith.constant 0 : i32
    %c0_i32_0 = arith.constant 0 : i32
    %c0_i32_1 = arith.constant 0 : i32
    return %c0_i32, %c0_i32_0 : i32, i32
  }
  func.func @transform_3(%arg0: i32) -> (i32, i32) {
    %c0_i32 = arith.constant 0 : i32
    %c0_i32_0 = arith.constant 0 : i32
    return %arg0, %c0_i32 : i32, i32
  }
}

</mosaic_0001>

<bundles_post_ra>
// kernel: tpu_custom_call.1
= control target key start
LH: loop header
LB: loop body
LE: loop exit
PB: predicated region body
PF: predicated region fallthrough
CT: control target
= control target key end

     0   :  { %8 = vsyncpa [#allocation3], 0  ;;  %s1148_s0 = inlined_call_operand.hbm [shape: bf16[128,128], index: 0, kind: input, shape index: {}]   ;;  %s1149_s1 = inlined_call_operand.hbm [shape: bf16[128,384], index: 1, kind: input, shape index: {}]   ;;  %s1150_s2 = inlined_call_operand.hbm [shape: f32[1,384], index: 2, kind: input, shape index: {}]   ;;  %s1151_s3 = inlined_call_operand.hbm [shape: bf16[128,384], index: 3, kind: output, shape index: {}]  }
   0x1   :  { %9 = vsyncpa [#allocation6], 0 }
   0x2   :  { %10 = vsyncpa [#allocation4], 0  ;;  %s1003_s12 = smov [#allocation5]   ;;  %s909_s16 = scalar_lea.hbm %s1149_s1, 3072 }
   0x3   :  { %s28_s13 = sshll.u32 %s1003_s12, 4  ;;  %p910_p0 = scmp.ne.s32.totalorder %s1149_s1, %s909_s16  ;;  %s29_s13 = int_to_ptr.vmem [resolvable:$true] %s28_s13 }
   0x4   :  { %p913_p1 = scmp.lt.u32.totalorder %s909_s16, %s1149_s1 }
   0x6   :  { %p915_p2 = pnand %p913_p1, %p910_p0 }
   0x8   :  { %918 = shalt.err (!%p915_p2)
}
   0x9   :  { %s919_s21 = scalar_lea.vmem %s29_s13, 3072  ;;  %p924_p4 = scmp.lt.s32.totalorder %s29_s13, %s29_s13 }
   0xa   :  { %p920_p3 = scmp.ne.s32.totalorder %s29_s13, %s919_s21  ;;  %p925_p5 = scmp.lt.s32.totalorder %s919_s21, %s919_s21 }
   0xc   :  { %p926_p6 = por %p925_p5, %p924_p4 }
   0xe   :  { %p927_p7 = pnand %p926_p6, %p920_p3 }
  0x10   :  { %930 = shalt.err (!%p927_p7)
}
  0x11   :  { %s1004_s22 = smov 192   ;;  %s1005_s23 = smov 12  }
  0x12   :  { %34 = dma.hbm_to_vmem [thread:$0]  %s1149_s1, 3072, %s29_s13, [#allocation6], %s1004_s22, %s1004_s22, %s1005_s23  }
  0x13   :  { %s1006_s26 = smov [#allocation2]   ;;  %s931_s30 = scalar_lea.hbm %s1148_s0, 1024 }
  0x14   :  { %s16_s27 = sshll.u32 %s1006_s26, 4  ;;  %p932_p8 = scmp.ne.s32.totalorder %s1148_s0, %s931_s30  ;;  %s17_s27 = int_to_ptr.vmem [resolvable:$true] %s16_s27 }
  0x15   :  { %p935_p9 = scmp.lt.u32.totalorder %s931_s30, %s1148_s0 }
  0x17   :  { %p937_p10 = pnand %p935_p9, %p932_p8 }
  0x19   :  { %940 = shalt.err (!%p937_p10)
}
  0x1a   :  { %s941_s8 = scalar_lea.vmem %s17_s27, 1024  ;;  %p946_p12 = scmp.lt.s32.totalorder %s17_s27, %s17_s27 }
  0x1b   :  { %p942_p11 = scmp.ne.s32.totalorder %s17_s27, %s941_s8  ;;  %p947_p13 = scmp.lt.s32.totalorder %s941_s8, %s941_s8 }
  0x1d   :  { %p948_p0 = por %p947_p13, %p946_p12 }
  0x1f   :  { %p949_p1 = pnand %p948_p0, %p942_p11 }
  0x21   :  { %952 = shalt.err (!%p949_p1)
}
  0x22   :  { %s1007_s1 = smov 64   ;;  %s1008_s9 = smov 4  }
  0x23   :  { %22 = dma.hbm_to_vmem [thread:$0]  %s1148_s0, 1024, %s17_s27, [#allocation3], %s1007_s1, %s1007_s1, %s1008_s9  }
  0x24   :  { %s1009_s12 = smov [#allocation7]   ;;  %s953_s16 = scalar_lea.hbm %s1150_s2, 48 }
  0x25   :  { %s41_s13 = sshll.u32 %s1009_s12, 4  ;;  %p954_p2 = scmp.ne.s32.totalorder %s1150_s2, %s953_s16  ;;  %s42_s13 = int_to_ptr.vmem [resolvable:$true] %s41_s13 }
  0x26   :  { %p957_p3 = scmp.lt.u32.totalorder %s953_s16, %s1150_s2 }
  0x28   :  { %p959_p4 = pnand %p957_p3, %p954_p2 }
  0x2a   :  { %962 = shalt.err (!%p959_p4)
}
  0x2b   :  { %s963_s21 = scalar_lea.vmem %s42_s13, 48  ;;  %s967_s0 = scalar_lea.vmem %s42_s13, 64 }
  0x2c   :  { %p964_p5 = scmp.ne.s32.totalorder %s42_s13, %s963_s21  ;;  %p968_p6 = scmp.lt.s32.totalorder %s42_s13, %s42_s13 }
  0x2d   :  { %p969_p7 = scmp.lt.s32.totalorder %s967_s0, %s963_s21 }
  0x2f   :  { %p970_p8 = por %p969_p7, %p968_p6 }
  0x31   :  { %p971_p9 = pnand %p970_p8, %p964_p5 }
  0x33   :  { %974 = shalt.err (!%p971_p9)
}
  0x34   :  { %44 = dma.hbm_to_vmem [thread:$0]  %s1150_s2, 48, %s42_s13, [#allocation6]  }
  0x35   :  { %997 = dma.done.wait [#allocation3], 1024  }
  0x36   :  { %998 = vsyncadd [#allocation3], 4294966272 }
  0x37   :  { %999 = dma.done.wait [#allocation6], 3120  }
  0x38   :  { %1000 = vsyncadd [#allocation6], 4294964176  ;;  %v1010_v0 = vmov 0   ;;  %v869_v1 = vld [vmem:[#allocation5 + $0x4] ss:$12 sps:$4 sm:$0xff]   ;;  %v897_v26 = vld [vmem:[#allocation2 + $0x8] sm:$0xff]   ;;  %v105_v33 = vlaneseq }
  0x39   :  { %328 = vmatprep.mubr.bf16.mxu0 %v1010_v0  ;;  %v871_v2 = vld [vmem:[#allocation5] ss:$12 sps:$4 sm:$0xff]   ;;  %296 = vmatprep.subr.bf16.mxu0 %v869_v1  ;;  %v872_v3 = vld [vmem:[#allocation5 + $0x1c] ss:$12 sps:$4 sm:$0xff]   ;;  %v874_v4 = vld [vmem:[#allocation5 + $0x18] ss:$12 sps:$4 sm:$0xff]  }
  0x3a   :  { %297 = vmatpush1.bf16.msra.mxu0 %v871_v2  ;;  %v875_v5 = vld [vmem:[#allocation5 + $0x34] ss:$12 sps:$4 sm:$0xff]   ;;  %v877_v6 = vld [vmem:[#allocation5 + $0x30] ss:$12 sps:$4 sm:$0xff]   ;;  %v878_v7 = vld [vmem:[#allocation5 + $0x4c] ss:$12 sps:$4 sm:$0xff]  }
  0x3b   :  { %298 = vmatprep.subr.bf16.mxu0 %v872_v3  ;;  %v880_v8 = vld [vmem:[#allocation5 + $0x48] ss:$12 sps:$4 sm:$0xff]   ;;  %v881_v9 = vld [vmem:[#allocation5 + $0x64] ss:$12 sps:$4 sm:$0xff]   ;;  %v895_v12 = vld [vmem:[#allocation5 + $0x20] ss:$12 sps:$4 sm:$0xff]  }
  0x3c   :  { %v893_v10 = vld [vmem:[#allocation5 + $0x8] ss:$12 sps:$4 sm:$0xff]   ;;  %v894_v11 = vld [vmem:[#allocation2] sm:$0xff]   ;;  %v898_v17 = vld [vmem:[#allocation5 + $0x50] ss:$12 sps:$4 sm:$0xff]   ;;  %v106_v34 = vshrl.u32 %v105_v33, 7 }
  0x3d   :  { %828 = vmatprep.subr.bf16.mxu1 %v893_v10  ;;  %v883_v13 = vld [vmem:[#allocation5 + $0x60] ss:$12 sps:$4 sm:$0xff]   ;;  %844 = vmatprep.mubr.bf16.mxu1 %v894_v11  ;;  %v896_v14 = vld [vmem:[#allocation5 + $0x38] ss:$12 sps:$4 sm:$0xff]   ;;  %v884_v15 = vld [vmem:[#allocation5 + $0x7c] ss:$12 sps:$4 sm:$0xff]  }
  0x3e   :  { %299 = vmatpush1.bf16.msra.mxu0 %v874_v4  ;;  %829 = vmatpush3.bf16.msra.mxu1 %v893_v10  ;;  %v886_v16 = vld [vmem:[#allocation5 + $0x78] ss:$12 sps:$4 sm:$0xff]   ;;  %v887_v18 = vld [vmem:[#allocation5 + $0x94] ss:$12 sps:$4 sm:$0xff]   ;;  %v889_v19 = vld [vmem:[#allocation5 + $0x90] ss:$12 sps:$4 sm:$0xff]  }
  0x3f   :  { %300 = vmatprep.subr.bf16.mxu0 %v875_v5  ;;  %830 = vmatprep.subr.bf16.mxu1 %v895_v12  ;;  %v899_v20 = vld [vmem:[#allocation5 + $0x68] ss:$12 sps:$4 sm:$0xff]   ;;  %v890_v21 = vld [vmem:[#allocation5 + $0xac] ss:$12 sps:$4 sm:$0xff]   ;;  %v904_v25 = vld [vmem:[#allocation5 + $0xb0] ss:$12 sps:$4 sm:$0xff]  }
  0x40   :  { %v892_v22 = vld [vmem:[#allocation5 + $0xa8] ss:$12 sps:$4 sm:$0xff]   ;;  %v901_v23 = vld [vmem:[#allocation5 + $0x80] ss:$12 sps:$4 sm:$0xff]   ;;  %v902_v24 = vld [vmem:[#allocation5 + $0x98] ss:$12 sps:$4 sm:$0xff]  }
  0x41   :  { %v900_v27 = vld [vmem:[#allocation2 + $0x10] sm:$0xff]   ;;  %v903_v28 = vld [vmem:[#allocation2 + $0x18] sm:$0xff]   ;;  %v905_v29 = vld [vmem:[#allocation2 + $0x20] sm:$0xff]   ;;  %v107_v35 = vsub.s32 0, %v106_v34  ;;  %v111_v37 = vsub.s32 1, %v106_v34  ;;  %v115_v49 = vsub.s32 2, %v106_v34 }
  0x42   :  { %301 = vmatpush1.bf16.msra.mxu0 %v877_v6  ;;  %831 = vmatpush3.bf16.msra.mxu1 %v895_v12  ;;  %v906_v30 = vld [vmem:[#allocation2 + $0x28] sm:$0xff]   ;;  %v907_v31 = vld [vmem:[#allocation2 + $0x30] sm:$0xff]   ;;  %v908_v32 = vld [vmem:[#allocation2 + $0x38] sm:$0xff]   ;;  %s1011_s2 = smov [#allocation8]  }
  0x43   :  { %302 = vmatprep.subr.bf16.mxu0 %v878_v7  ;;  %832 = vmatprep.subr.bf16.mxu1 %v896_v14  ;;  %v103_v36 = vld [vmem:[#allocation7] sm:$0x7]  ;;  %s703_s26 = sshll.u32 %s1011_s2, 4  ;;  %s704_s26 = int_to_ptr.vmem [resolvable:$true] %s703_s26 }
  0x44   :  { %v1079_v38 = vrot.slane %v103_v36, %v107_v35  ;;  %v1081_v39 = vrot.slane %v103_v36, %v111_v37  ;;  %v1087_v52 = vrot.slane %v103_v36, %v115_v49  ;;  %s975_s27 = scalar_lea.vmem %s704_s26, 3072  ;;  %p980_p11 = scmp.lt.s32.totalorder %s704_s26, %s704_s26 }
  0x45   :  { %p976_p10 = scmp.ne.s32.totalorder %s704_s26, %s975_s27  ;;  %p981_p12 = scmp.lt.s32.totalorder %s975_s27, %s975_s27 }
  0x46   :  { %303 = vmatpush1.bf16.msra.mxu0 %v880_v8  ;;  %833 = vmatpush3.bf16.msra.mxu1 %v896_v14 }
  0x47   :  { %304 = vmatprep.subr.bf16.mxu0 %v881_v9  ;;  %834 = vmatprep.subr.bf16.mxu1 %v898_v17  ;;  %p982_p13 = por %p981_p12, %p980_p11 }
  0x49   :  { %p983_p0 = pnand %p982_p13, %p976_p10 }
  0x4a   :  { %305 = vmatpush1.bf16.msra.mxu0 %v883_v13  ;;  %835 = vmatpush3.bf16.msra.mxu1 %v898_v17 }
  0x4b   :  { %306 = vmatprep.subr.bf16.mxu0 %v884_v15  ;;  %836 = vmatprep.subr.bf16.mxu1 %v899_v20 }
  0x4e   :  { %307 = vmatpush1.bf16.msra.mxu0 %v886_v16  ;;  %837 = vmatpush3.bf16.msra.mxu1 %v899_v20 }
  0x4f   :  { %308 = vmatprep.subr.bf16.mxu0 %v887_v18  ;;  %838 = vmatprep.subr.bf16.mxu1 %v901_v23 }
  0x52   :  { %309 = vmatpush1.bf16.msra.mxu0 %v889_v19  ;;  %839 = vmatpush3.bf16.msra.mxu1 %v901_v23 }
  0x53   :  { %310 = vmatprep.subr.bf16.mxu0 %v890_v21  ;;  %840 = vmatprep.subr.bf16.mxu1 %v902_v24 }
  0x56   :  { %311 = vmatpush1.bf16.msra.mxu0 %v892_v22  ;;  %841 = vmatpush3.bf16.msra.mxu1 %v902_v24 }
  0x57   :  { %842 = vmatprep.subr.bf16.mxu1 %v904_v25 }
  0x59   :  { %329 = vmatmul.mubr.bf16.vlgmr.msra.gmra.mrb[0].mxu0 %v894_v11 }
  0x5a   :  { %338 = vmatprep.mubr.bf16.mxu0 %v1010_v0  ;;  %843 = vmatpush3.bf16.msra.mxu1 %v904_v25 }
  0x5d   :  { %845 = vmatmul.mubr.bf16.vlgmr.msra.gmra.mrb[0].mxu1 %v897_v26 }
  0x5e   :  { %848 = vmatprep.mubr.bf16.mxu1 %v900_v27 }
  0x61   :  { %339 = vmatmul.mubr.bf16.gmra.mrb[4].mxu0 %v897_v26 }
  0x62   :  { %348 = vmatprep.mubr.bf16.mxu0 %v1010_v0 }
  0x65   :  { %849 = vmatmul.mubr.bf16.gmra.mrb[4].mxu1 %v903_v28 }
  0x66   :  { %852 = vmatprep.mubr.bf16.mxu1 %v905_v29 }
  0x69   :  { %349 = vmatmul.mubr.bf16.gmra.mrb[8].mxu0 %v900_v27 }
  0x6a   :  { %358 = vmatprep.mubr.bf16.mxu0 %v1010_v0 }
  0x6d   :  { %853 = vmatmul.mubr.bf16.gmra.mrb[8].mxu1 %v906_v30 }
  0x6e   :  { %856 = vmatprep.mubr.bf16.mxu1 %v907_v31 }
  0x71   :  { %359 = vmatmul.mubr.bf16.gmra.mrb[12].mxu0 %v903_v28 }
  0x72   :  { %368 = vmatprep.mubr.bf16.mxu0 %v1010_v0 }
  0x75   :  { %857 = vmatmul.mubr.bf16.gmra.mrb[12].mxu1 %v908_v32 }
  0x79   :  { %369 = vmatmul.mubr.bf16.gmra.mrb[16].mxu0 %v905_v29 }
  0x7a   :  { %378 = vmatprep.mubr.bf16.mxu0 %v1010_v0 }
  0x81   :  { %379 = vmatmul.mubr.bf16.gmra.mrb[20].mxu0 %v906_v30 }
  0x82   :  { %388 = vmatprep.mubr.bf16.mxu0 %v1010_v0 }
  0x89   :  { %389 = vmatmul.mubr.bf16.gmra.mrb[24].mxu0 %v907_v31 }
  0x8a   :  { %398 = vmatprep.mubr.bf16.mxu0 %v1010_v0 }
  0x91   :  { %399 = vmatmul.mubr.bf16.gmra.mrb[28].mxu0 %v908_v32 }
 0x12c   :  { %v330_v40 = vpop.f32.mrb[0].mxu0 }
 0x12d   :  { %v331_v41 = vadd.f32 %v330_v40, %v1079_v38  ;;  %v332_v42 = vpop.f32.mrb[1].mxu0 }
 0x12e   :  { %v333_v43 = vadd.f32 %v332_v42, %v1081_v39  ;;  %v334_v44 = vpop.f32.mrb[2].mxu0 }
 0x12f   :  { %v335_v45 = vadd.f32 %v334_v44, %v1079_v38  ;;  %v336_v46 = vpop.f32.mrb[3].mxu0 }
 0x130   :  { %v780_v47 = vpack.c.bf16 %v333_v43, %v331_v41  ;;  %v337_v48 = vadd.f32 %v336_v46, %v1081_v39  ;;  %v846_v59 = vpop.f32.mrb[0].mxu1 }
 0x131   :  { %v452_v62 = vadd.f32 %v846_v59, %v1087_v52  ;;  %v443_v63 = vpop.f32.mrb[1].mxu1 }
 0x132   :  { %666 = vst [vmem:[#allocation8] sm:$0xff] %v780_v47  ;;  %v782_v50 = vpack.c.bf16 %v337_v48, %v335_v45  ;;  %v444_v0 = vadd.f32 %v443_v63, %v1087_v52  ;;  %v847_v1 = vpop.f32.mrb[2].mxu1 }
 0x133   :  { %v785_v3 = vpack.c.bf16 %v452_v62, %v452_v62  ;;  %v455_v4 = vadd.f32 %v847_v1, %v1087_v52  ;;  %v446_v5 = vpop.f32.mrb[3].mxu1 }
 0x134   :  { %668 = vst [vmem:[#allocation8 + $0xc] sm:$0xff] %v782_v50  ;;  %v340_v51 = vpop.f32.mrb[4].mxu0  ;;  %v781_v6 = vpack.c.bf16 %v444_v0, %v444_v0  ;;  %v447_v7 = vadd.f32 %v446_v5, %v1087_v52 }
 0x135   :  { %v341_v53 = vadd.f32 %v340_v51, %v1079_v38  ;;  %v342_v54 = vpop.f32.mrb[5].mxu0  ;;  %671 = vst [vmem:[#allocation8 + $0x20] sm:$0xf] %v785_v3  ;;  %v787_v9 = vpack.c.bf16 %v455_v4, %v455_v4 }
 0x136   :  { %v343_v55 = vadd.f32 %v342_v54, %v1081_v39  ;;  %v344_v56 = vpop.f32.mrb[6].mxu0  ;;  %667 = vst [vmem:[#allocation8 + $0x8] sm:$0xf] %v781_v6  ;;  %v783_v12 = vpack.c.bf16 %v447_v7, %v447_v7 }
 0x137   :  { %v345_v57 = vadd.f32 %v344_v56, %v1079_v38  ;;  %v346_v58 = vpop.f32.mrb[7].mxu0  ;;  %673 = vst [vmem:[#allocation8 + $0x2c] sm:$0xf] %v787_v9 }
 0x138   :  { %v784_v60 = vpack.c.bf16 %v343_v55, %v341_v53  ;;  %v347_v61 = vadd.f32 %v346_v58, %v1081_v39  ;;  %669 = vst [vmem:[#allocation8 + $0x14] sm:$0xf] %v783_v12  ;;  %v850_v17 = vpop.f32.mrb[4].mxu1 }
 0x139   :  { %v468_v20 = vadd.f32 %v850_v17, %v1087_v52  ;;  %v459_v21 = vpop.f32.mrb[5].mxu1 }
 0x13a   :  { %670 = vst [vmem:[#allocation8 + $0x18] sm:$0xff] %v784_v60  ;;  %v786_v2 = vpack.c.bf16 %v347_v61, %v345_v57  ;;  %v460_v22 = vadd.f32 %v459_v21, %v1087_v52  ;;  %v851_v23 = vpop.f32.mrb[6].mxu1 }
 0x13b   :  { %v793_v25 = vpack.c.bf16 %v468_v20, %v468_v20  ;;  %v471_v26 = vadd.f32 %v851_v23, %v1087_v52  ;;  %v462_v27 = vpop.f32.mrb[7].mxu1 }
 0x13c   :  { %672 = vst [vmem:[#allocation8 + $0x24] sm:$0xff] %v786_v2  ;;  %v350_v8 = vpop.f32.mrb[8].mxu0  ;;  %v789_v28 = vpack.c.bf16 %v460_v22, %v460_v22  ;;  %v463_v29 = vadd.f32 %v462_v27, %v1087_v52 }
 0x13d   :  { %v351_v10 = vadd.f32 %v350_v8, %v1079_v38  ;;  %v352_v11 = vpop.f32.mrb[9].mxu0  ;;  %679 = vst [vmem:[#allocation8 + $0x50] sm:$0xf] %v793_v25  ;;  %v795_v31 = vpack.c.bf16 %v471_v26, %v471_v26 }
 0x13e   :  { %v353_v13 = vadd.f32 %v352_v11, %v1081_v39  ;;  %v354_v14 = vpop.f32.mrb[10].mxu0  ;;  %675 = vst [vmem:[#allocation8 + $0x38] sm:$0xf] %v789_v28  ;;  %v791_v34 = vpack.c.bf16 %v463_v29, %v463_v29 }
 0x13f   :  { %v355_v15 = vadd.f32 %v354_v14, %v1079_v38  ;;  %v356_v16 = vpop.f32.mrb[11].mxu0  ;;  %681 = vst [vmem:[#allocation8 + $0x5c] sm:$0xf] %v795_v31 }
 0x140   :  { %v788_v18 = vpack.c.bf16 %v353_v13, %v351_v10  ;;  %v357_v19 = vadd.f32 %v356_v16, %v1081_v39  ;;  %677 = vst [vmem:[#allocation8 + $0x44] sm:$0xf] %v791_v34  ;;  %v854_v41 = vpop.f32.mrb[8].mxu1 }
 0x141   :  { %v484_v44 = vadd.f32 %v854_v41, %v1087_v52  ;;  %v475_v45 = vpop.f32.mrb[9].mxu1 }
 0x142   :  { %674 = vst [vmem:[#allocation8 + $0x30] sm:$0xff] %v788_v18  ;;  %v790_v24 = vpack.c.bf16 %v357_v19, %v355_v15  ;;  %v476_v46 = vadd.f32 %v475_v45, %v1087_v52  ;;  %v855_v47 = vpop.f32.mrb[10].mxu1 }
 0x143   :  { %v801_v49 = vpack.c.bf16 %v484_v44, %v484_v44  ;;  %v487_v50 = vadd.f32 %v855_v47, %v1087_v52  ;;  %v478_v51 = vpop.f32.mrb[11].mxu1 }
 0x144   :  { %676 = vst [vmem:[#allocation8 + $0x3c] sm:$0xff] %v790_v24  ;;  %v360_v30 = vpop.f32.mrb[12].mxu0  ;;  %v797_v53 = vpack.c.bf16 %v476_v46, %v476_v46  ;;  %v479_v54 = vadd.f32 %v478_v51, %v1087_v52 }
 0x145   :  { %v361_v32 = vadd.f32 %v360_v30, %v1079_v38  ;;  %v362_v33 = vpop.f32.mrb[13].mxu0  ;;  %687 = vst [vmem:[#allocation8 + $0x80] sm:$0xf] %v801_v49  ;;  %v803_v56 = vpack.c.bf16 %v487_v50, %v487_v50 }
 0x146   :  { %v363_v35 = vadd.f32 %v362_v33, %v1081_v39  ;;  %v364_v36 = vpop.f32.mrb[14].mxu0  ;;  %683 = vst [vmem:[#allocation8 + $0x68] sm:$0xf] %v797_v53  ;;  %v799_v59 = vpack.c.bf16 %v479_v54, %v479_v54 }
 0x147   :  { %v365_v37 = vadd.f32 %v364_v36, %v1079_v38  ;;  %v366_v40 = vpop.f32.mrb[15].mxu0  ;;  %689 = vst [vmem:[#allocation8 + $0x8c] sm:$0xf] %v803_v56 }
 0x148   :  { %v792_v42 = vpack.c.bf16 %v363_v35, %v361_v32  ;;  %v367_v43 = vadd.f32 %v366_v40, %v1081_v39  ;;  %685 = vst [vmem:[#allocation8 + $0x74] sm:$0xf] %v799_v59  ;;  %v858_v0 = vpop.f32.mrb[12].mxu1 }
 0x149   :  { %v500_v3 = vadd.f32 %v858_v0, %v1087_v52  ;;  %v491_v4 = vpop.f32.mrb[13].mxu1 }
 0x14a   :  { %678 = vst [vmem:[#allocation8 + $0x48] sm:$0xff] %v792_v42  ;;  %v794_v48 = vpack.c.bf16 %v367_v43, %v365_v37  ;;  %v492_v5 = vadd.f32 %v491_v4, %v1087_v52  ;;  %v859_v6 = vpop.f32.mrb[14].mxu1 }
 0x14b   :  { %v809_v8 = vpack.c.bf16 %v500_v3, %v500_v3  ;;  %v503_v9 = vadd.f32 %v859_v6, %v1087_v52  ;;  %v494_v10 = vpop.f32.mrb[15].mxu1 }
 0x14c   :  { %680 = vst [vmem:[#allocation8 + $0x54] sm:$0xff] %v794_v48  ;;  %v370_v55 = vpop.f32.mrb[16].mxu0  ;;  %v805_v11 = vpack.c.bf16 %v492_v5, %v492_v5  ;;  %v495_v12 = vadd.f32 %v494_v10, %v1087_v52 }
 0x14d   :  { %v371_v57 = vadd.f32 %v370_v55, %v1079_v38  ;;  %v372_v58 = vpop.f32.mrb[17].mxu0  ;;  %695 = vst [vmem:[#allocation8 + $0xb0] sm:$0xf] %v809_v8  ;;  %v811_v14 = vpack.c.bf16 %v503_v9, %v503_v9 }
 0x14e   :  { %v373_v60 = vadd.f32 %v372_v58, %v1081_v39  ;;  %v374_v61 = vpop.f32.mrb[18].mxu0  ;;  %691 = vst [vmem:[#allocation8 + $0x98] sm:$0xf] %v805_v11  ;;  %v807_v17 = vpack.c.bf16 %v495_v12, %v495_v12 }
 0x14f   :  { %v375_v62 = vadd.f32 %v374_v61, %v1079_v38  ;;  %v376_v63 = vpop.f32.mrb[19].mxu0  ;;  %697 = vst [vmem:[#allocation8 + $0xbc] sm:$0xf] %v811_v14 }
 0x150   :  { %v796_v1 = vpack.c.bf16 %v373_v60, %v371_v57  ;;  %v377_v2 = vadd.f32 %v376_v63, %v1081_v39  ;;  %693 = vst [vmem:[#allocation8 + $0xa4] sm:$0xf] %v807_v17 }
 0x152   :  { %682 = vst [vmem:[#allocation8 + $0x60] sm:$0xff] %v796_v1  ;;  %v798_v7 = vpack.c.bf16 %v377_v2, %v375_v62 }
 0x154   :  { %684 = vst [vmem:[#allocation8 + $0x6c] sm:$0xff] %v798_v7  ;;  %v380_v13 = vpop.f32.mrb[20].mxu0 }
 0x155   :  { %v381_v15 = vadd.f32 %v380_v13, %v1079_v38  ;;  %v382_v16 = vpop.f32.mrb[21].mxu0 }
 0x156   :  { %v383_v18 = vadd.f32 %v382_v16, %v1081_v39  ;;  %v384_v19 = vpop.f32.mrb[22].mxu0 }
 0x157   :  { %v385_v20 = vadd.f32 %v384_v19, %v1079_v38  ;;  %v386_v21 = vpop.f32.mrb[23].mxu0 }
 0x158   :  { %v800_v22 = vpack.c.bf16 %v383_v18, %v381_v15  ;;  %v387_v52 = vadd.f32 %v386_v21, %v1081_v39 }
 0x15a   :  { %686 = vst [vmem:[#allocation8 + $0x78] sm:$0xff] %v800_v22  ;;  %v802_v23 = vpack.c.bf16 %v387_v52, %v385_v20 }
 0x15c   :  { %688 = vst [vmem:[#allocation8 + $0x84] sm:$0xff] %v802_v23  ;;  %v390_v24 = vpop.f32.mrb[24].mxu0 }
 0x15d   :  { %v391_v25 = vadd.f32 %v390_v24, %v1079_v38  ;;  %v392_v26 = vpop.f32.mrb[25].mxu0 }
 0x15e   :  { %v393_v27 = vadd.f32 %v392_v26, %v1081_v39  ;;  %v394_v28 = vpop.f32.mrb[26].mxu0 }
 0x15f   :  { %v395_v29 = vadd.f32 %v394_v28, %v1079_v38  ;;  %v396_v30 = vpop.f32.mrb[27].mxu0 }
 0x160   :  { %v804_v31 = vpack.c.bf16 %v393_v27, %v391_v25  ;;  %v397_v32 = vadd.f32 %v396_v30, %v1081_v39 }
 0x162   :  { %690 = vst [vmem:[#allocation8 + $0x90] sm:$0xff] %v804_v31  ;;  %v806_v33 = vpack.c.bf16 %v397_v32, %v395_v29 }
 0x164   :  { %692 = vst [vmem:[#allocation8 + $0x9c] sm:$0xff] %v806_v33  ;;  %v400_v34 = vpop.f32.mrb[28].mxu0 }
 0x165   :  { %v401_v35 = vadd.f32 %v400_v34, %v1079_v38  ;;  %v402_v36 = vpop.f32.mrb[29].mxu0 }
 0x166   :  { %v403_v37 = vadd.f32 %v402_v36, %v1081_v39  ;;  %v404_v40 = vpop.f32.mrb[30].mxu0 }
 0x167   :  { %v405_v41 = vadd.f32 %v404_v40, %v1079_v38  ;;  %v406_v42 = vpop.f32.mrb[31].mxu0 }
 0x168   :  { %v808_v43 = vpack.c.bf16 %v403_v37, %v401_v35  ;;  %v407_v44 = vadd.f32 %v406_v42, %v1081_v39 }
 0x16a   :  { %694 = vst [vmem:[#allocation8 + $0xa8] sm:$0xff] %v808_v43  ;;  %v810_v45 = vpack.c.bf16 %v407_v44, %v405_v41 }
 0x16c   :  { %696 = vst [vmem:[#allocation8 + $0xb4] sm:$0xff] %v810_v45 }
 0x16d   :  { %986 = shalt.err (!%p983_p0)
}
 0x16e   :  { %s987_s30 = scalar_lea.hbm %s1151_s3, 3072 }
 0x16f   :  { %p988_p1 = scmp.ne.s32.totalorder %s1151_s3, %s987_s30  ;;  %p991_p2 = scmp.lt.u32.totalorder %s987_s30, %s1151_s3 }
 0x171   :  { %p993_p3 = pnand %p991_p2, %p988_p1 }
 0x173   :  { %996 = shalt.err (!%p993_p3)
}
 0x174   :  { %709 = dma.vmem_to_hbm [thread:$0]  %s704_s26, 3072, %s1151_s3, [#allocation4], %s1004_s22, %s1004_s22, %s1005_s23  }
 0x175   :  { %1001 = dma.done.wait [#allocation4], 3072  }
 0x176   :  { %1002 = vsyncadd [#allocation4], 4294964224 }
 0x177   :  { %713 = vsyncpa [#allocation3], 1 }
 0x178   :  { %714 = vsyncpa [#allocation6], 1 }
 0x179   :  { %715 = vsyncpa [#allocation4], 1 }

</bundles_post_ra>
